<compile_context>
chip_gen: v6e
topology: v6e:2x2x1
jax: 0.10.0
libtpu: 0.0.40
codegen_flags: <defaults>
</compile_context>

<pallas_src>
import jax
import jax.numpy as jnp
from jax.experimental import pallas as pl
from jax.experimental.pallas import tpu as pltpu

_HIDDEN = 20
_NCHAINS = 4  # independent VPU accumulator chains (4 VALU slots available)


def _mlp_kernel(x_ref, p_ref, o_ref):
    # x_ref: (1, N) VMEM f32 -- batch on the lane axis (lane-dense).
    # p_ref: (61,)  SMEM f32 -- packed params:
    #        [0:20]  hidden_layer weight w1 (fan_in == 1)
    #        [20:40] hidden_layer bias   b1
    #        [40:60] out_layer weight    w2
    #        [60]    out_layer bias      b2
    # o_ref: (1, N) VMEM f32
    x = x_ref[...]
    # y = b2 + sum_j w2[j] * relu(w1[j] * x + b1[j])
    # Unrolled over the 20 hidden units with _NCHAINS independent partial
    # accumulators (breaks the single serial add-dependence chain).
    accs = [jnp.zeros_like(x) for _ in range(_NCHAINS)]
    for j in range(_HIDDEN):
        w1j = p_ref[j]
        b1j = p_ref[_HIDDEN + j]
        w2j = p_ref[2 * _HIDDEN + j]
        h = jnp.maximum(w1j * x + b1j, 0.0)
        accs[j % _NCHAINS] = accs[j % _NCHAINS] + w2j * h
    total = (accs[0] + accs[1]) + (accs[2] + accs[3])
    o_ref[...] = total + p_ref[3 * _HIDDEN]


def pack_params(w1, b1, w2, b2):
    """Flatten the PyTorch-layout Linear params into one (61,) f32 vector.

    Done once (outside the per-call path) so the forward pass sees a single
    SMEM operand.
    """
    return jnp.concatenate([
        w1.reshape(-1).astype(jnp.float32),   # (20,)
        b1.reshape(-1).astype(jnp.float32),   # (20,)
        w2.reshape(-1).astype(jnp.float32),   # (20,)
        b2.reshape(-1).astype(jnp.float32),   # (1,)
    ])


@jax.jit
def net_forward(x, params):
    """x: (N, 1) f32, params: (61,) packed f32  ->  (N, 1) f32."""
    n = x.shape[0]
    x_row = x.astype(jnp.float32).reshape(1, n)   # lane-dense (1, N)

    vmem_row = pl.BlockSpec((1, n), lambda: (0, 0))     # full-extent block
    smem = pl.BlockSpec(memory_space=pltpu.MemorySpace.SMEM)

    y_row = pl.pallas_call(
        _mlp_kernel,
        out_shape=jax.ShapeDtypeStruct((1, n), jnp.float32),
        in_specs=[vmem_row, smem],
        out_specs=vmem_row,
    )(x_row, params)

    return y_row.reshape(n, 1)


def init_params(key):
    """Deterministic PyTorch-style init: U(-1/sqrt(fan_in), 1/sqrt(fan_in))."""
    k1, k2, k3, k4 = jax.random.split(key, 4)
    # hidden_layer: Linear(1, 20)  -> fan_in = 1
    bound1 = 1.0
    w1 = jax.random.uniform(k1, (20, 1), jnp.float32, -bound1, bound1)
    b1 = jax.random.uniform(k2, (20,), jnp.float32, -bound1, bound1)
    # out_layer: Linear(20, 1)     -> fan_in = 20
    bound2 = 1.0 / float(jnp.sqrt(20.0))
    w2 = jax.random.uniform(k3, (1, 20), jnp.float32, -bound2, bound2)
    b2 = jax.random.uniform(k4, (1,), jnp.float32, -bound2, bound2)
    return w1, b1, w2, b2


if __name__ == "__main__":
    key = jax.random.PRNGKey(0)
    w1, b1, w2, b2 = init_params(key)
    params = pack_params(w1, b1, w2, b2)          # packed once, reused per call

    # Input as in the reference script: x = unsqueeze(linspace(-1, 1, 100), 1)
    x = jnp.linspace(-1.0, 1.0, 100, dtype=jnp.float32).reshape(100, 1)

    y = net_forward(x, params)
    y = jax.block_until_ready(y)

    # Cross-check against a plain-JAX reference of the same forward pass.
    h_ref = jnp.maximum(x @ w1.T + b1, 0.0)
    y_ref = h_ref @ w2.T + b2
    assert y.shape == (100, 1)
    assert jnp.allclose(y, y_ref, atol=1e-5, rtol=1e-5), float(
        jnp.max(jnp.abs(y - y_ref))
    )

    print("KERNEL_OK")
</pallas_src>

<mosaic_0001>
module attributes {stable_mosaic.version = 11 : i64} {
  func.func @_mlp_kernel(%arg0: memref<1x100xf32, #tpu.memory_space<vmem>>, %arg1: memref<61xf32, #tpu.memory_space<smem>>, %arg2: memref<1x100xf32, #tpu.memory_space<vmem>>) attributes {dimension_semantics = [], scalar_prefetch = 0 : i64, scratch_operands = 0 : i64, tpu.core_type = #tpu.core_type<tc>} {
    %c0 = arith.constant 0 : index
    %c0_0 = arith.constant 0 : index
    %0 = vector.load %arg0[%c0, %c0_0] : memref<1x100xf32, #tpu.memory_space<vmem>>, vector<1x100xf32>
    %cst = arith.constant 0.000000e+00 : f32
    %1 = vector.broadcast %cst : f32 to vector<1x100xf32>
    %cst_1 = arith.constant 0.000000e+00 : f32
    %2 = vector.broadcast %cst_1 : f32 to vector<1x100xf32>
    %cst_2 = arith.constant 0.000000e+00 : f32
    %3 = vector.broadcast %cst_2 : f32 to vector<1x100xf32>
    %cst_3 = arith.constant 0.000000e+00 : f32
    %4 = vector.broadcast %cst_3 : f32 to vector<1x100xf32>
    %c0_4 = arith.constant 0 : index
    %5 = memref.load %arg1[%c0_4] : memref<61xf32, #tpu.memory_space<smem>>
    %c20 = arith.constant 20 : index
    %6 = memref.load %arg1[%c20] : memref<61xf32, #tpu.memory_space<smem>>
    %c40 = arith.constant 40 : index
    %7 = memref.load %arg1[%c40] : memref<61xf32, #tpu.memory_space<smem>>
    %8 = vector.broadcast %5 : f32 to vector<1x100xf32>
    %9 = arith.mulf %8, %0 : vector<1x100xf32>
    %10 = vector.broadcast %6 : f32 to vector<1x100xf32>
    %11 = arith.addf %9, %10 : vector<1x100xf32>
    %cst_5 = arith.constant 0.000000e+00 : f32
    %12 = vector.broadcast %cst_5 : f32 to vector<1x100xf32>
    %13 = arith.maximumf %11, %12 : vector<1x100xf32>
    %14 = vector.broadcast %7 : f32 to vector<1x100xf32>
    %15 = arith.mulf %14, %13 : vector<1x100xf32>
    %16 = arith.addf %1, %15 : vector<1x100xf32>
    %c1 = arith.constant 1 : index
    %17 = memref.load %arg1[%c1] : memref<61xf32, #tpu.memory_space<smem>>
    %c21 = arith.constant 21 : index
    %18 = memref.load %arg1[%c21] : memref<61xf32, #tpu.memory_space<smem>>
    %c41 = arith.constant 41 : index
    %19 = memref.load %arg1[%c41] : memref<61xf32, #tpu.memory_space<smem>>
    %20 = vector.broadcast %17 : f32 to vector<1x100xf32>
    %21 = arith.mulf %20, %0 : vector<1x100xf32>
    %22 = vector.broadcast %18 : f32 to vector<1x100xf32>
    %23 = arith.addf %21, %22 : vector<1x100xf32>
    %cst_6 = arith.constant 0.000000e+00 : f32
    %24 = vector.broadcast %cst_6 : f32 to vector<1x100xf32>
    %25 = arith.maximumf %23, %24 : vector<1x100xf32>
    %26 = vector.broadcast %19 : f32 to vector<1x100xf32>
    %27 = arith.mulf %26, %25 : vector<1x100xf32>
    %28 = arith.addf %2, %27 : vector<1x100xf32>
    %c2 = arith.constant 2 : index
    %29 = memref.load %arg1[%c2] : memref<61xf32, #tpu.memory_space<smem>>
    %c22 = arith.constant 22 : index
    %30 = memref.load %arg1[%c22] : memref<61xf32, #tpu.memory_space<smem>>
    %c42 = arith.constant 42 : index
    %31 = memref.load %arg1[%c42] : memref<61xf32, #tpu.memory_space<smem>>
    %32 = vector.broadcast %29 : f32 to vector<1x100xf32>
    %33 = arith.mulf %32, %0 : vector<1x100xf32>
    %34 = vector.broadcast %30 : f32 to vector<1x100xf32>
    %35 = arith.addf %33, %34 : vector<1x100xf32>
    %cst_7 = arith.constant 0.000000e+00 : f32
    %36 = vector.broadcast %cst_7 : f32 to vector<1x100xf32>
    %37 = arith.maximumf %35, %36 : vector<1x100xf32>
    %38 = vector.broadcast %31 : f32 to vector<1x100xf32>
    %39 = arith.mulf %38, %37 : vector<1x100xf32>
    %40 = arith.addf %3, %39 : vector<1x100xf32>
    %c3 = arith.constant 3 : index
    %41 = memref.load %arg1[%c3] : memref<61xf32, #tpu.memory_space<smem>>
    %c23 = arith.constant 23 : index
    %42 = memref.load %arg1[%c23] : memref<61xf32, #tpu.memory_space<smem>>
    %c43 = arith.constant 43 : index
    %43 = memref.load %arg1[%c43] : memref<61xf32, #tpu.memory_space<smem>>
    %44 = vector.broadcast %41 : f32 to vector<1x100xf32>
    %45 = arith.mulf %44, %0 : vector<1x100xf32>
    %46 = vector.broadcast %42 : f32 to vector<1x100xf32>
    %47 = arith.addf %45, %46 : vector<1x100xf32>
    %cst_8 = arith.constant 0.000000e+00 : f32
    %48 = vector.broadcast %cst_8 : f32 to vector<1x100xf32>
    %49 = arith.maximumf %47, %48 : vector<1x100xf32>
    %50 = vector.broadcast %43 : f32 to vector<1x100xf32>
    %51 = arith.mulf %50, %49 : vector<1x100xf32>
    %52 = arith.addf %4, %51 : vector<1x100xf32>
    %c4 = arith.constant 4 : index
    %53 = memref.load %arg1[%c4] : memref<61xf32, #tpu.memory_space<smem>>
    %c24 = arith.constant 24 : index
    %54 = memref.load %arg1[%c24] : memref<61xf32, #tpu.memory_space<smem>>
    %c44 = arith.constant 44 : index
    %55 = memref.load %arg1[%c44] : memref<61xf32, #tpu.memory_space<smem>>
    %56 = vector.broadcast %53 : f32 to vector<1x100xf32>
    %57 = arith.mulf %56, %0 : vector<1x100xf32>
    %58 = vector.broadcast %54 : f32 to vector<1x100xf32>
    %59 = arith.addf %57, %58 : vector<1x100xf32>
    %cst_9 = arith.constant 0.000000e+00 : f32
    %60 = vector.broadcast %cst_9 : f32 to vector<1x100xf32>
    %61 = arith.maximumf %59, %60 : vector<1x100xf32>
    %62 = vector.broadcast %55 : f32 to vector<1x100xf32>
    %63 = arith.mulf %62, %61 : vector<1x100xf32>
    %64 = arith.addf %16, %63 : vector<1x100xf32>
    %c5 = arith.constant 5 : index
    %65 = memref.load %arg1[%c5] : memref<61xf32, #tpu.memory_space<smem>>
    %c25 = arith.constant 25 : index
    %66 = memref.load %arg1[%c25] : memref<61xf32, #tpu.memory_space<smem>>
    %c45 = arith.constant 45 : index
    %67 = memref.load %arg1[%c45] : memref<61xf32, #tpu.memory_space<smem>>
    %68 = vector.broadcast %65 : f32 to vector<1x100xf32>
    %69 = arith.mulf %68, %0 : vector<1x100xf32>
    %70 = vector.broadcast %66 : f32 to vector<1x100xf32>
    %71 = arith.addf %69, %70 : vector<1x100xf32>
    %cst_10 = arith.constant 0.000000e+00 : f32
    %72 = vector.broadcast %cst_10 : f32 to vector<1x100xf32>
    %73 = arith.maximumf %71, %72 : vector<1x100xf32>
    %74 = vector.broadcast %67 : f32 to vector<1x100xf32>
    %75 = arith.mulf %74, %73 : vector<1x100xf32>
    %76 = arith.addf %28, %75 : vector<1x100xf32>
    %c6 = arith.constant 6 : index
    %77 = memref.load %arg1[%c6] : memref<61xf32, #tpu.memory_space<smem>>
    %c26 = arith.constant 26 : index
    %78 = memref.load %arg1[%c26] : memref<61xf32, #tpu.memory_space<smem>>
    %c46 = arith.constant 46 : index
    %79 = memref.load %arg1[%c46] : memref<61xf32, #tpu.memory_space<smem>>
    %80 = vector.broadcast %77 : f32 to vector<1x100xf32>
    %81 = arith.mulf %80, %0 : vector<1x100xf32>
    %82 = vector.broadcast %78 : f32 to vector<1x100xf32>
    %83 = arith.addf %81, %82 : vector<1x100xf32>
    %cst_11 = arith.constant 0.000000e+00 : f32
    %84 = vector.broadcast %cst_11 : f32 to vector<1x100xf32>
    %85 = arith.maximumf %83, %84 : vector<1x100xf32>
    %86 = vector.broadcast %79 : f32 to vector<1x100xf32>
    %87 = arith.mulf %86, %85 : vector<1x100xf32>
    %88 = arith.addf %40, %87 : vector<1x100xf32>
    %c7 = arith.constant 7 : index
    %89 = memref.load %arg1[%c7] : memref<61xf32, #tpu.memory_space<smem>>
    %c27 = arith.constant 27 : index
    %90 = memref.load %arg1[%c27] : memref<61xf32, #tpu.memory_space<smem>>
    %c47 = arith.constant 47 : index
    %91 = memref.load %arg1[%c47] : memref<61xf32, #tpu.memory_space<smem>>
    %92 = vector.broadcast %89 : f32 to vector<1x100xf32>
    %93 = arith.mulf %92, %0 : vector<1x100xf32>
    %94 = vector.broadcast %90 : f32 to vector<1x100xf32>
    %95 = arith.addf %93, %94 : vector<1x100xf32>
    %cst_12 = arith.constant 0.000000e+00 : f32
    %96 = vector.broadcast %cst_12 : f32 to vector<1x100xf32>
    %97 = arith.maximumf %95, %96 : vector<1x100xf32>
    %98 = vector.broadcast %91 : f32 to vector<1x100xf32>
    %99 = arith.mulf %98, %97 : vector<1x100xf32>
    %100 = arith.addf %52, %99 : vector<1x100xf32>
    %c8 = arith.constant 8 : index
    %101 = memref.load %arg1[%c8] : memref<61xf32, #tpu.memory_space<smem>>
    %c28 = arith.constant 28 : index
    %102 = memref.load %arg1[%c28] : memref<61xf32, #tpu.memory_space<smem>>
    %c48 = arith.constant 48 : index
    %103 = memref.load %arg1[%c48] : memref<61xf32, #tpu.memory_space<smem>>
    %104 = vector.broadcast %101 : f32 to vector<1x100xf32>
    %105 = arith.mulf %104, %0 : vector<1x100xf32>
    %106 = vector.broadcast %102 : f32 to vector<1x100xf32>
    %107 = arith.addf %105, %106 : vector<1x100xf32>
    %cst_13 = arith.constant 0.000000e+00 : f32
    %108 = vector.broadcast %cst_13 : f32 to vector<1x100xf32>
    %109 = arith.maximumf %107, %108 : vector<1x100xf32>
    %110 = vector.broadcast %103 : f32 to vector<1x100xf32>
    %111 = arith.mulf %110, %109 : vector<1x100xf32>
    %112 = arith.addf %64, %111 : vector<1x100xf32>
    %c9 = arith.constant 9 : index
    %113 = memref.load %arg1[%c9] : memref<61xf32, #tpu.memory_space<smem>>
    %c29 = arith.constant 29 : index
    %114 = memref.load %arg1[%c29] : memref<61xf32, #tpu.memory_space<smem>>
    %c49 = arith.constant 49 : index
    %115 = memref.load %arg1[%c49] : memref<61xf32, #tpu.memory_space<smem>>
    %116 = vector.broadcast %113 : f32 to vector<1x100xf32>
    %117 = arith.mulf %116, %0 : vector<1x100xf32>
    %118 = vector.broadcast %114 : f32 to vector<1x100xf32>
    %119 = arith.addf %117, %118 : vector<1x100xf32>
    %cst_14 = arith.constant 0.000000e+00 : f32
    %120 = vector.broadcast %cst_14 : f32 to vector<1x100xf32>
    %121 = arith.maximumf %119, %120 : vector<1x100xf32>
    %122 = vector.broadcast %115 : f32 to vector<1x100xf32>
    %123 = arith.mulf %122, %121 : vector<1x100xf32>
    %124 = arith.addf %76, %123 : vector<1x100xf32>
    %c10 = arith.constant 10 : index
    %125 = memref.load %arg1[%c10] : memref<61xf32, #tpu.memory_space<smem>>
    %c30 = arith.constant 30 : index
    %126 = memref.load %arg1[%c30] : memref<61xf32, #tpu.memory_space<smem>>
    %c50 = arith.constant 50 : index
    %127 = memref.load %arg1[%c50] : memref<61xf32, #tpu.memory_space<smem>>
    %128 = vector.broadcast %125 : f32 to vector<1x100xf32>
    %129 = arith.mulf %128, %0 : vector<1x100xf32>
    %130 = vector.broadcast %126 : f32 to vector<1x100xf32>
    %131 = arith.addf %129, %130 : vector<1x100xf32>
    %cst_15 = arith.constant 0.000000e+00 : f32
    %132 = vector.broadcast %cst_15 : f32 to vector<1x100xf32>
    %133 = arith.maximumf %131, %132 : vector<1x100xf32>
    %134 = vector.broadcast %127 : f32 to vector<1x100xf32>
    %135 = arith.mulf %134, %133 : vector<1x100xf32>
    %136 = arith.addf %88, %135 : vector<1x100xf32>
    %c11 = arith.constant 11 : index
    %137 = memref.load %arg1[%c11] : memref<61xf32, #tpu.memory_space<smem>>
    %c31 = arith.constant 31 : index
    %138 = memref.load %arg1[%c31] : memref<61xf32, #tpu.memory_space<smem>>
    %c51 = arith.constant 51 : index
    %139 = memref.load %arg1[%c51] : memref<61xf32, #tpu.memory_space<smem>>
    %140 = vector.broadcast %137 : f32 to vector<1x100xf32>
    %141 = arith.mulf %140, %0 : vector<1x100xf32>
    %142 = vector.broadcast %138 : f32 to vector<1x100xf32>
    %143 = arith.addf %141, %142 : vector<1x100xf32>
    %cst_16 = arith.constant 0.000000e+00 : f32
    %144 = vector.broadcast %cst_16 : f32 to vector<1x100xf32>
    %145 = arith.maximumf %143, %144 : vector<1x100xf32>
    %146 = vector.broadcast %139 : f32 to vector<1x100xf32>
    %147 = arith.mulf %146, %145 : vector<1x100xf32>
    %148 = arith.addf %100, %147 : vector<1x100xf32>
    %c12 = arith.constant 12 : index
    %149 = memref.load %arg1[%c12] : memref<61xf32, #tpu.memory_space<smem>>
    %c32 = arith.constant 32 : index
    %150 = memref.load %arg1[%c32] : memref<61xf32, #tpu.memory_space<smem>>
    %c52 = arith.constant 52 : index
    %151 = memref.load %arg1[%c52] : memref<61xf32, #tpu.memory_space<smem>>
    %152 = vector.broadcast %149 : f32 to vector<1x100xf32>
    %153 = arith.mulf %152, %0 : vector<1x100xf32>
    %154 = vector.broadcast %150 : f32 to vector<1x100xf32>
    %155 = arith.addf %153, %154 : vector<1x100xf32>
    %cst_17 = arith.constant 0.000000e+00 : f32
    %156 = vector.broadcast %cst_17 : f32 to vector<1x100xf32>
    %157 = arith.maximumf %155, %156 : vector<1x100xf32>
    %158 = vector.broadcast %151 : f32 to vector<1x100xf32>
    %159 = arith.mulf %158, %157 : vector<1x100xf32>
    %160 = arith.addf %112, %159 : vector<1x100xf32>
    %c13 = arith.constant 13 : index
    %161 = memref.load %arg1[%c13] : memref<61xf32, #tpu.memory_space<smem>>
    %c33 = arith.constant 33 : index
    %162 = memref.load %arg1[%c33] : memref<61xf32, #tpu.memory_space<smem>>
    %c53 = arith.constant 53 : index
    %163 = memref.load %arg1[%c53] : memref<61xf32, #tpu.memory_space<smem>>
    %164 = vector.broadcast %161 : f32 to vector<1x100xf32>
    %165 = arith.mulf %164, %0 : vector<1x100xf32>
    %166 = vector.broadcast %162 : f32 to vector<1x100xf32>
    %167 = arith.addf %165, %166 : vector<1x100xf32>
    %cst_18 = arith.constant 0.000000e+00 : f32
    %168 = vector.broadcast %cst_18 : f32 to vector<1x100xf32>
    %169 = arith.maximumf %167, %168 : vector<1x100xf32>
    %170 = vector.broadcast %163 : f32 to vector<1x100xf32>
    %171 = arith.mulf %170, %169 : vector<1x100xf32>
    %172 = arith.addf %124, %171 : vector<1x100xf32>
    %c14 = arith.constant 14 : index
    %173 = memref.load %arg1[%c14] : memref<61xf32, #tpu.memory_space<smem>>
    %c34 = arith.constant 34 : index
    %174 = memref.load %arg1[%c34] : memref<61xf32, #tpu.memory_space<smem>>
    %c54 = arith.constant 54 : index
    %175 = memref.load %arg1[%c54] : memref<61xf32, #tpu.memory_space<smem>>
    %176 = vector.broadcast %173 : f32 to vector<1x100xf32>
    %177 = arith.mulf %176, %0 : vector<1x100xf32>
    %178 = vector.broadcast %174 : f32 to vector<1x100xf32>
    %179 = arith.addf %177, %178 : vector<1x100xf32>
    %cst_19 = arith.constant 0.000000e+00 : f32
    %180 = vector.broadcast %cst_19 : f32 to vector<1x100xf32>
    %181 = arith.maximumf %179, %180 : vector<1x100xf32>
    %182 = vector.broadcast %175 : f32 to vector<1x100xf32>
    %183 = arith.mulf %182, %181 : vector<1x100xf32>
    %184 = arith.addf %136, %183 : vector<1x100xf32>
    %c15 = arith.constant 15 : index
    %185 = memref.load %arg1[%c15] : memref<61xf32, #tpu.memory_space<smem>>
    %c35 = arith.constant 35 : index
    %186 = memref.load %arg1[%c35] : memref<61xf32, #tpu.memory_space<smem>>
    %c55 = arith.constant 55 : index
    %187 = memref.load %arg1[%c55] : memref<61xf32, #tpu.memory_space<smem>>
    %188 = vector.broadcast %185 : f32 to vector<1x100xf32>
    %189 = arith.mulf %188, %0 : vector<1x100xf32>
    %190 = vector.broadcast %186 : f32 to vector<1x100xf32>
    %191 = arith.addf %189, %190 : vector<1x100xf32>
    %cst_20 = arith.constant 0.000000e+00 : f32
    %192 = vector.broadcast %cst_20 : f32 to vector<1x100xf32>
    %193 = arith.maximumf %191, %192 : vector<1x100xf32>
    %194 = vector.broadcast %187 : f32 to vector<1x100xf32>
    %195 = arith.mulf %194, %193 : vector<1x100xf32>
    %196 = arith.addf %148, %195 : vector<1x100xf32>
    %c16 = arith.constant 16 : index
    %197 = memref.load %arg1[%c16] : memref<61xf32, #tpu.memory_space<smem>>
    %c36 = arith.constant 36 : index
    %198 = memref.load %arg1[%c36] : memref<61xf32, #tpu.memory_space<smem>>
    %c56 = arith.constant 56 : index
    %199 = memref.load %arg1[%c56] : memref<61xf32, #tpu.memory_space<smem>>
    %200 = vector.broadcast %197 : f32 to vector<1x100xf32>
    %201 = arith.mulf %200, %0 : vector<1x100xf32>
    %202 = vector.broadcast %198 : f32 to vector<1x100xf32>
    %203 = arith.addf %201, %202 : vector<1x100xf32>
    %cst_21 = arith.constant 0.000000e+00 : f32
    %204 = vector.broadcast %cst_21 : f32 to vector<1x100xf32>
    %205 = arith.maximumf %203, %204 : vector<1x100xf32>
    %206 = vector.broadcast %199 : f32 to vector<1x100xf32>
    %207 = arith.mulf %206, %205 : vector<1x100xf32>
    %208 = arith.addf %160, %207 : vector<1x100xf32>
    %c17 = arith.constant 17 : index
    %209 = memref.load %arg1[%c17] : memref<61xf32, #tpu.memory_space<smem>>
    %c37 = arith.constant 37 : index
    %210 = memref.load %arg1[%c37] : memref<61xf32, #tpu.memory_space<smem>>
    %c57 = arith.constant 57 : index
    %211 = memref.load %arg1[%c57] : memref<61xf32, #tpu.memory_space<smem>>
    %212 = vector.broadcast %209 : f32 to vector<1x100xf32>
    %213 = arith.mulf %212, %0 : vector<1x100xf32>
    %214 = vector.broadcast %210 : f32 to vector<1x100xf32>
    %215 = arith.addf %213, %214 : vector<1x100xf32>
    %cst_22 = arith.constant 0.000000e+00 : f32
    %216 = vector.broadcast %cst_22 : f32 to vector<1x100xf32>
    %217 = arith.maximumf %215, %216 : vector<1x100xf32>
    %218 = vector.broadcast %211 : f32 to vector<1x100xf32>
    %219 = arith.mulf %218, %217 : vector<1x100xf32>
    %220 = arith.addf %172, %219 : vector<1x100xf32>
    %c18 = arith.constant 18 : index
    %221 = memref.load %arg1[%c18] : memref<61xf32, #tpu.memory_space<smem>>
    %c38 = arith.constant 38 : index
    %222 = memref.load %arg1[%c38] : memref<61xf32, #tpu.memory_space<smem>>
    %c58 = arith.constant 58 : index
    %223 = memref.load %arg1[%c58] : memref<61xf32, #tpu.memory_space<smem>>
    %224 = vector.broadcast %221 : f32 to vector<1x100xf32>
    %225 = arith.mulf %224, %0 : vector<1x100xf32>
    %226 = vector.broadcast %222 : f32 to vector<1x100xf32>
    %227 = arith.addf %225, %226 : vector<1x100xf32>
    %cst_23 = arith.constant 0.000000e+00 : f32
    %228 = vector.broadcast %cst_23 : f32 to vector<1x100xf32>
    %229 = arith.maximumf %227, %228 : vector<1x100xf32>
    %230 = vector.broadcast %223 : f32 to vector<1x100xf32>
    %231 = arith.mulf %230, %229 : vector<1x100xf32>
    %232 = arith.addf %184, %231 : vector<1x100xf32>
    %c19 = arith.constant 19 : index
    %233 = memref.load %arg1[%c19] : memref<61xf32, #tpu.memory_space<smem>>
    %c39 = arith.constant 39 : index
    %234 = memref.load %arg1[%c39] : memref<61xf32, #tpu.memory_space<smem>>
    %c59 = arith.constant 59 : index
    %235 = memref.load %arg1[%c59] : memref<61xf32, #tpu.memory_space<smem>>
    %236 = vector.broadcast %233 : f32 to vector<1x100xf32>
    %237 = arith.mulf %236, %0 : vector<1x100xf32>
    %238 = vector.broadcast %234 : f32 to vector<1x100xf32>
    %239 = arith.addf %237, %238 : vector<1x100xf32>
    %cst_24 = arith.constant 0.000000e+00 : f32
    %240 = vector.broadcast %cst_24 : f32 to vector<1x100xf32>
    %241 = arith.maximumf %239, %240 : vector<1x100xf32>
    %242 = vector.broadcast %235 : f32 to vector<1x100xf32>
    %243 = arith.mulf %242, %241 : vector<1x100xf32>
    %244 = arith.addf %196, %243 : vector<1x100xf32>
    %245 = arith.addf %208, %220 : vector<1x100xf32>
    %246 = arith.addf %232, %244 : vector<1x100xf32>
    %247 = arith.addf %245, %246 : vector<1x100xf32>
    %c60 = arith.constant 60 : index
    %248 = memref.load %arg1[%c60] : memref<61xf32, #tpu.memory_space<smem>>
    %249 = vector.broadcast %248 : f32 to vector<1x100xf32>
    %250 = arith.addf %247, %249 : vector<1x100xf32>
    %c0_25 = arith.constant 0 : index
    %c0_26 = arith.constant 0 : index
    %251 = vector.load %arg2[%c0_25, %c0_26] : memref<1x100xf32, #tpu.memory_space<vmem>>, vector<1x100xf32>
    tpu.vector_store %arg2[%c0_25, %c0_26], %250 {strides = array<i32>} : memref<1x100xf32, #tpu.memory_space<vmem>>, vector<1x100xf32>,
    return
  }
}

</mosaic_0001>

<bundles_post_ra>
// kernel: net_forward.1
= control target key start
LH: loop header
LB: loop body
LE: loop exit
PB: predicated region body
PF: predicated region fallthrough
CT: control target
= control target key end

     0   :  { %7 = vsyncpa [#allocation4], 0  ;;  %s583_s0 = inlined_call_operand.vmem [shape: f32[1,100], index: 0, kind: input, shape index: {}]   ;;  %s584_s1 = inlined_call_operand.vmem [shape: f32[61], index: 1, kind: input, shape index: {}]   ;;  %s585_s2 = inlined_call_operand.hbm [shape: f32[1,100], index: 2, kind: output, shape index: {}]  }
   0x1   :  { %8 = vsyncpa [#allocation3], 0  ;;  %s17_s11 = sshll.u32 %s584_s1, 4  ;;  %s18_s11 = int_to_ptr.vmem [resolvable:$true] %s17_s11 }
   0x2   :  { %s331_s12 = scalar_lea.vmem %s18_s11, 16  ;;  %p336_p1 = scmp.lt.s32.totalorder %s18_s11, %s18_s11 }
   0x3   :  { %p332_p0 = scmp.ne.s32.totalorder %s18_s11, %s331_s12  ;;  %p337_p2 = scmp.lt.s32.totalorder %s331_s12, %s331_s12 }
   0x5   :  { %p338_p3 = por %p337_p2, %p336_p1 }
   0x7   :  { %p339_p4 = pnand %p338_p3, %p332_p0 }
   0x9   :  { %342 = shalt.err (!%p339_p4)
}
   0xa   :  { %s367_s13 = smov [#allocation2]  }
   0xb   :  { %20 = dma.vmem_to_smem %s18_s11, 16, %s367_s13, [#allocation4]  }
   0xc   :  { %363 = dma.done.wait [#allocation4], 16  }
   0xd   :  { %364 = vsyncadd [#allocation4], 4294967280 }
   0xe   :  { %24 = sfence }
   0xf   :  { %s26_s14 = sld [smem:[#allocation2]]  ;;  %v426_v0 = vld [vmem:[%s583_s0] sm:$0x1]  ;;  %vm252_vm0 = vcmask 811008  }
  0x10   :  { %s387_s15 = sld [smem:[#allocation2 + $0x14]] }
  0x11   :  { %s389_s16 = sld [smem:[#allocation2 + $0x28]] }
  0x12   :  { %s271_s17 = sld [smem:[#allocation2 + $0x1]] }
  0x13   :  { %s391_s1 = sld [smem:[#allocation2 + $0x15]] }
  0x14   :  { %s393_s18 = sld [smem:[#allocation2 + $0x29]] }
  0x15   :  { %s395_s19 = sld [smem:[#allocation2 + $0x2]]  ;;  %v29_v1 = vstv %s26_s14 }
  0x16   :  { %s397_s20 = sld [smem:[#allocation2 + $0x16]]  ;;  %v30_v3 = vmul.f32 %v29_v1, %v426_v0  ;;  %v31_v4 = vstv %s387_s15 }
  0x17   :  { %s399_s21 = sld [smem:[#allocation2 + $0x2a]]  ;;  %v34_v22 = vstv %s389_s16 }
  0x18   :  { %s401_s22 = sld [smem:[#allocation2 + $0x3]]  ;;  %v40_v2 = vstv %s271_s17  ;;  %v32_v9 = vadd.f32 %v31_v4, %v30_v3 }
  0x19   :  { %s403_s23 = sld [smem:[#allocation2 + $0x17]]  ;;  %v41_v6 = vmul.f32 %v40_v2, %v426_v0  ;;  %v42_v8 = vstv %s391_s1 }
  0x1a   :  { %s405_s24 = sld [smem:[#allocation2 + $0x2b]]  ;;  %v33_v18 = vmax.f32 %v32_v9, 0.0  ;;  %v45_v26 = vstv %s393_s18 }
  0x1b   :  { %s280_s25 = sld [smem:[#allocation2 + $0x4]]  ;;  %v51_v7 = vstv %s395_s19  ;;  %v43_v14 = vadd.f32 %v42_v8, %v41_v6 }
  0x1c   :  { %s407_s26 = sld [smem:[#allocation2 + $0x18]]  ;;  %v52_v12 = vmul.f32 %v51_v7, %v426_v0  ;;  %v53_v15 = vstv %s397_s20  ;;  %v35_v30 = vmul.f32 %v34_v22, %v33_v18 }
  0x1d   :  { %s409_s27 = sld [smem:[#allocation2 + $0x2c]]  ;;  %v44_v24 = vmax.f32 %v43_v14, 0.0  ;;  %v56_v39 = vstv %s399_s21 }
  0x1e   :  { %s411_s28 = sld [smem:[#allocation2 + $0x5]]  ;;  %v62_v10 = vstv %s401_s22  ;;  %v54_v23 = vadd.f32 %v53_v15, %v52_v12 }
  0x1f   :  { %s413_s29 = sld [smem:[#allocation2 + $0x19]]  ;;  %v63_v16 = vmul.f32 %v62_v10, %v426_v0  ;;  %v64_v19 = vstv %s403_s23  ;;  %v46_v38 = vmul.f32 %v45_v26, %v44_v24 }
  0x20   :  { %s415_s30 = sld [smem:[#allocation2 + $0x2d]]  ;;  %v55_v34 = vmax.f32 %v54_v23, 0.0  ;;  %v67_v43 = vstv %s405_s24 }
  0x21   :  { %s417_s3 = sld [smem:[#allocation2 + $0x6]]  ;;  %v73_v5 = vstv %s280_s25  ;;  %v65_v27 = vadd.f32 %v64_v19, %v63_v16 }
  0x22   :  { %s419_s4 = sld [smem:[#allocation2 + $0x1a]]  ;;  %v74_v11 = vmul.f32 %v73_v5, %v426_v0  ;;  %v75_v13 = vstv %s407_s26  ;;  %v57_v50 = vmul.f32 %v56_v39, %v55_v34 }
  0x23   :  { %s421_s5 = sld [smem:[#allocation2 + $0x2e]]  ;;  %v78_v35 = vstv %s409_s27  ;;  %v66_v42 = vmax.f32 %v65_v27, 0.0 }
  0x24   :  { %s428_s8 = sld [smem:[#allocation2 + $0x7]]  ;;  %v84_v17 = vstv %s411_s28  ;;  %v76_v20 = vadd.f32 %v75_v13, %v74_v11 }
  0x25   :  { %s430_s9 = sld [smem:[#allocation2 + $0x1b]]  ;;  %v85_v25 = vmul.f32 %v84_v17, %v426_v0  ;;  %v86_v28 = vstv %s413_s29  ;;  %v509_v58 = vmul.f32 %v67_v43, %v66_v42 }
  0x26   :  { %s432_s10 = sld [smem:[#allocation2 + $0x2f]]  ;;  %v77_v31 = vmax.f32 %v76_v20, 0.0  ;;  %v89_v59 = vstv %s415_s30 }
  0x27   :  { %s435_s11 = sld [smem:[#allocation2 + $0x8]]  ;;  %v95_v21 = vstv %s417_s3  ;;  %v87_v40 = vadd.f32 %v86_v28, %v85_v25 }
  0x28   :  { %s438_s12 = sld [smem:[#allocation2 + $0x1c]]  ;;  %v96_v29 = vmul.f32 %v95_v21, %v426_v0  ;;  %v97_v32 = vstv %s419_s4  ;;  %v79_v46 = vmul.f32 %v78_v35, %v77_v31 }
  0x29   :  { %s442_s0 = sld [smem:[#allocation2 + $0x30]]  ;;  %v88_v54 = vmax.f32 %v87_v40, 0.0  ;;  %v100_v63 = vstv %s421_s5 }
  0x2a   :  { %s445_s13 = sld [smem:[#allocation2 + $0x9]]  ;;  %v106_v33 = vstv %s428_s8  ;;  %v98_v44 = vadd.f32 %v97_v32, %v96_v29  ;;  %v80_v62 = vadd.f32 %v79_v46, %v35_v30 }
  0x2b   :  { %s449_s14 = sld [smem:[#allocation2 + $0x1d]]  ;;  %v107_v45 = vmul.f32 %v106_v33, %v426_v0  ;;  %v108_v47 = vstv %s430_s9  ;;  %v90_v7 = vmul.f32 %v89_v59, %v88_v54 }
  0x2c   :  { %s453_s15 = sld [smem:[#allocation2 + $0x31]]  ;;  %v99_v60 = vmax.f32 %v98_v44, 0.0  ;;  %v111_v13 = vstv %s432_s10 }
  0x2d   :  { %s456_s17 = sld [smem:[#allocation2 + $0xa]]  ;;  %v117_v36 = vstv %s435_s11  ;;  %v109_v61 = vadd.f32 %v108_v47, %v107_v45  ;;  %v91_v23 = vadd.f32 %v90_v7, %v46_v38 }
  0x2e   :  { %s460_s1 = sld [smem:[#allocation2 + $0x1e]]  ;;  %v118_v48 = vmul.f32 %v117_v36, %v426_v0  ;;  %v119_v51 = vstv %s438_s12  ;;  %v101_v11 = vmul.f32 %v100_v63, %v99_v60 }
  0x2f   :  { %s464_s19 = sld [smem:[#allocation2 + $0x32]]  ;;  %v110_v12 = vmax.f32 %v109_v61, 0.0  ;;  %v122_v16 = vstv %s442_s0 }
  0x30   :  { %s467_s20 = sld [smem:[#allocation2 + $0xb]]  ;;  %v128_v37 = vstv %s445_s13  ;;  %v120_v1 = vadd.f32 %v119_v51, %v118_v48  ;;  %v102_v27 = vadd.f32 %v101_v11, %v57_v50 }
  0x31   :  { %s470_s22 = sld [smem:[#allocation2 + $0x1f]]  ;;  %v129_v49 = vmul.f32 %v128_v37, %v426_v0  ;;  %v130_v52 = vstv %s449_s14  ;;  %v112_v28 = vmul.f32 %v111_v13, %v110_v12 }
  0x32   :  { %s475_s23 = sld [smem:[#allocation2 + $0x33]]  ;;  %v121_v15 = vmax.f32 %v120_v1, 0.0  ;;  %v133_v19 = vstv %s453_s15 }
  0x33   :  { %s479_s16 = sld [smem:[#allocation2 + $0xc]]  ;;  %v139_v41 = vstv %s456_s17  ;;  %v131_v2 = vadd.f32 %v130_v52, %v129_v49  ;;  %v113_v47 = vadd.f32 %v112_v28, %v509_v58 }
  0x34   :  { %s484_s18 = sld [smem:[#allocation2 + $0x20]]  ;;  %v140_v53 = vmul.f32 %v139_v41, %v426_v0  ;;  %v141_v55 = vstv %s460_s1  ;;  %v123_v31 = vmul.f32 %v122_v16, %v121_v15  ;;  %s368_s1 = smov [#allocation5]  }
  0x35   :  { %s488_s25 = sld [smem:[#allocation2 + $0x34]]  ;;  %v132_v17 = vmax.f32 %v131_v2, 0.0  ;;  %v144_v24 = vstv %s464_s19  ;;  %s260_s19 = sshll.u32 %s368_s1, 4  ;;  %s261_s19 = int_to_ptr.vmem [resolvable:$true] %s260_s19 }
  0x36   :  { %s492_s26 = sld [smem:[#allocation2 + $0xd]]  ;;  %v150_v56 = vstv %s467_s20  ;;  %v142_v3 = vadd.f32 %v141_v55, %v140_v53  ;;  %v124_v48 = vadd.f32 %v123_v31, %v80_v62  ;;  %s343_s20 = scalar_lea.vmem %s261_s19, 16 }
  0x37   :  { %s497_s21 = sld [smem:[#allocation2 + $0x21]]  ;;  %v151_v4 = vmul.f32 %v150_v56, %v426_v0  ;;  %v152_v8 = vstv %s470_s22  ;;  %v134_v32 = vmul.f32 %v133_v19, %v132_v17  ;;  %p344_p5 = scmp.ne.s32.totalorder %s261_s19, %s343_s20 }
  0x38   :  { %s502_s24 = sld [smem:[#allocation2 + $0x35]]  ;;  %v143_v20 = vmax.f32 %v142_v3, 0.0  ;;  %v155_v37 = vstv %s475_s23  ;;  %s347_s22 = scalar_lea.vmem %s261_s19, 32 }
  0x39   :  { %v161_v57 = vstv %s479_s16  ;;  %s507_s27 = sld [smem:[#allocation2 + $0xe]]  ;;  %v153_v21 = vadd.f32 %v152_v8, %v151_v4  ;;  %v135_v49 = vadd.f32 %v134_v32, %v91_v23  ;;  %p348_p6 = scmp.lt.s32.totalorder %s261_s19, %s261_s19 }
  0x3a   :  { %s512_s28 = sld [smem:[#allocation2 + $0x22]]  ;;  %v162_v5 = vmul.f32 %v161_v57, %v426_v0  ;;  %v163_v9 = vstv %s484_s18  ;;  %v145_v35 = vmul.f32 %v144_v24, %v143_v20  ;;  %p349_p7 = scmp.lt.s32.totalorder %s347_s22, %s343_s20 }
  0x3b   :  { %s515_s29 = sld [smem:[#allocation2 + $0x36]]  ;;  %v154_v36 = vmax.f32 %v153_v21, 0.0  ;;  %v166_v39 = vstv %s488_s25 }
  0x3c   :  { %v172_v6 = vstv %s492_s26  ;;  %s520_s30 = sld [smem:[#allocation2 + $0xf]]  ;;  %v164_v22 = vadd.f32 %v163_v9, %v162_v5  ;;  %v146_v58 = vadd.f32 %v145_v35, %v102_v27  ;;  %p350_p8 = por %p349_p7, %p348_p6 }
  0x3d   :  { %v173_v10 = vmul.f32 %v172_v6, %v426_v0  ;;  %s525_s3 = sld [smem:[#allocation2 + $0x23]]  ;;  %v174_v14 = vstv %s497_s21  ;;  %v156_v50 = vmul.f32 %v155_v37, %v154_v36 }
  0x3e   :  { %s529_s4 = sld [smem:[#allocation2 + $0x37]]  ;;  %v165_v38 = vmax.f32 %v164_v22, 0.0  ;;  %v177_v43 = vstv %s502_s24  ;;  %p351_p9 = pnand %p350_p8, %p344_p5 }
  0x3f   :  { %v183_v18 = vstv %s507_s27  ;;  %s533_s5 = sld [smem:[#allocation2 + $0x10]]  ;;  %v175_v25 = vadd.f32 %v174_v14, %v173_v10  ;;  %v157_v3 = vadd.f32 %v156_v50, %v113_v47 }
  0x40   :  { %s536_s6 = sld [smem:[#allocation2 + $0x24]]  ;;  %v184_v26 = vmul.f32 %v183_v18, %v426_v0  ;;  %v185_v29 = vstv %s512_s28  ;;  %v167_v51 = vmul.f32 %v166_v39, %v165_v38 }
  0x41   :  { %s540_s7 = sld [smem:[#allocation2 + $0x38]]  ;;  %v176_v40 = vmax.f32 %v175_v25, 0.0  ;;  %v188_v59 = vstv %s515_s29 }
  0x42   :  { %v194_v30 = vstv %s520_s30  ;;  %s544_s8 = sld [smem:[#allocation2 + $0x11]]  ;;  %v186_v41 = vadd.f32 %v185_v29, %v184_v26  ;;  %v168_v7 = vadd.f32 %v167_v51, %v124_v48 }
  0x43   :  { %v195_v33 = vmul.f32 %v194_v30, %v426_v0  ;;  %v196_v34 = vstv %s525_s3  ;;  %s548_s9 = sld [smem:[#allocation2 + $0x25]]  ;;  %v178_v54 = vmul.f32 %v177_v43, %v176_v40 }
  0x44   :  { %s551_s10 = sld [smem:[#allocation2 + $0x39]]  ;;  %v187_v55 = vmax.f32 %v186_v41, 0.0  ;;  %v199_v62 = vstv %s529_s4 }
  0x45   :  { %v205_v42 = vstv %s533_s5  ;;  %s555_s11 = sld [smem:[#allocation2 + $0x12]]  ;;  %v197_v44 = vadd.f32 %v196_v34, %v195_v33  ;;  %v179_v8 = vadd.f32 %v178_v54, %v135_v49 }
  0x46   :  { %v206_v45 = vmul.f32 %v205_v42, %v426_v0  ;;  %v207_v46 = vstv %s536_s6  ;;  %s560_s12 = sld [smem:[#allocation2 + $0x26]]  ;;  %v189_v9 = vmul.f32 %v188_v59, %v187_v55 }
  0x47   :  { %s563_s0 = sld [smem:[#allocation2 + $0x3a]]  ;;  %v198_v60 = vmax.f32 %v197_v44, 0.0  ;;  %v210_v63 = vstv %s540_s7 }
  0x48   :  { %v208_v52 = vadd.f32 %v207_v46, %v206_v45  ;;  %v216_v53 = vstv %s544_s8  ;;  %s325_s13 = sld [smem:[#allocation2 + $0x13]]  ;;  %v190_v20 = vadd.f32 %v189_v9, %v146_v58 }
  0x49   :  { %v217_v56 = vmul.f32 %v216_v53, %v426_v0  ;;  %v218_v57 = vstv %s548_s9  ;;  %s326_s14 = sld [smem:[#allocation2 + $0x27]]  ;;  %v200_v11 = vmul.f32 %v199_v62, %v198_v60 }
  0x4a   :  { %v209_v61 = vmax.f32 %v208_v52, 0.0  ;;  %s569_s15 = sld [smem:[#allocation2 + $0x3b]]  ;;  %v221_v4 = vstv %s551_s10 }
  0x4b   :  { %v219_v1 = vadd.f32 %v218_v57, %v217_v56  ;;  %v227_v2 = vstv %s555_s11  ;;  %s328_s17 = sld [smem:[#allocation2 + $0x3c]]  ;;  %v201_v24 = vadd.f32 %v200_v11, %v157_v3 }
  0x4c   :  { %v228_v5 = vmul.f32 %v227_v2, %v426_v0  ;;  %v229_v6 = vstv %s560_s12  ;;  %v211_v12 = vmul.f32 %v210_v63, %v209_v61 }
  0x4d   :  { %v220_v10 = vmax.f32 %v219_v1, 0.0  ;;  %v232_v16 = vstv %s563_s0 }
  0x4e   :  { %v230_v13 = vadd.f32 %v229_v6, %v228_v5  ;;  %v238_v14 = vstv %s325_s13  ;;  %v212_v25 = vadd.f32 %v211_v12, %v168_v7 }
  0x4f   :  { %v222_v15 = vmul.f32 %v221_v4, %v220_v10  ;;  %v239_v17 = vmul.f32 %v238_v14, %v426_v0  ;;  %v240_v18 = vstv %s326_s14 }
  0x50   :  { %v231_v19 = vmax.f32 %v230_v13, 0.0  ;;  %v243_v23 = vstv %s569_s15 }
  0x51   :  { %v241_v21 = vadd.f32 %v240_v18, %v239_v17  ;;  %v223_v26 = vadd.f32 %v222_v15, %v179_v8  ;;  %v250_v33 = vstv %s328_s17 }
  0x52   :  { %v233_v22 = vmul.f32 %v232_v16, %v231_v19 }
  0x53   :  { %v242_v27 = vmax.f32 %v241_v21, 0.0  ;;  %v246_v31 = vadd.f32 %v223_v26, %v212_v25 }
  0x54   :  { %v234_v28 = vadd.f32 %v233_v22, %v190_v20 }
  0x55   :  { %v244_v29 = vmul.f32 %v243_v23, %v242_v27 }
  0x57   :  { %v245_v30 = vadd.f32 %v244_v29, %v201_v24 }
  0x59   :  { %v247_v32 = vadd.f32 %v245_v30, %v234_v28 }
  0x5b   :  { %v248_v0 = vadd.f32 %v247_v32, %v246_v31 }
  0x5d   :  { %v251_v34 = vadd.f32 %v250_v33, %v248_v0 }
  0x5f   :  { %253 = vst.msk [vmem:[#allocation5] sm:$0x1] %vm252_vm0, %v251_v34 }
  0x60   :  { %354 = shalt.err (!%p351_p9)
}
  0x61   :  { %263 = dma.vmem_to_hbm [thread:$0]  %s261_s19, 16, %s585_s2, [#allocation3]  }
  0x62   :  { %365 = dma.done.wait [#allocation3], 16  }
  0x63   :  { %366 = vsyncadd [#allocation3], 4294967280 }
  0x64   :  { %267 = vsyncpa [#allocation3], 1 }
  0x65   :  { %268 = vsyncpa [#allocation4], 1 }

</bundles_post_ra>
